<compile_context>
chip_gen: v5e
topology: v5e:2x2
jax: 0.10.0
libtpu: 0.0.40
codegen_flags: <defaults>
</compile_context>

<pallas_src>
import functools

import jax
import jax.numpy as jnp
from jax.experimental import pallas as pl
from jax.experimental.pallas import tpu as pltpu


_VALID = ('dot', 'exact', 'mul', 'plus', 'minus', 'concat')

VMEM_LIMIT = 32 * 1024 * 1024          # explicit scoped-VMEM budget (safe on v5e/v6e/v7x)
PAIR_OUT_TILE_BYTES = 2 * 1024 * 1024  # target output-tile size for mem-bound kernels


def _pick_tile(dim, cap, align):
    """Largest tile <= cap that divides `dim` and is a multiple of `align`.

    Falls back to the full dim (always legal: block dim == array dim)."""
    if dim <= cap:
        return dim
    t = (cap // align) * align
    while t >= align:
        if dim % t == 0:
            return t
        t -= align
    return dim


# ---------------------------------------------------------------------------
# 'dot' (plain / cosine) — MXU kernel, tiled over (B, L, R)
# ---------------------------------------------------------------------------
def _dot_kernel(x_ref, y_ref, o_ref, *, normalize):
    # x_ref: (TL, D), y_ref: (TR, D), o_ref: (TL, TR)
    x = x_ref[...].astype(jnp.float32)
    y = y_ref[...].astype(jnp.float32)
    if normalize:
        # F.normalize(p=2, dim=-1): v / max(||v||, 1e-12)  (rsqrt goes to the EUP)
        x = x * jax.lax.rsqrt(
            jnp.maximum(jnp.sum(x * x, axis=-1, keepdims=True), 1e-24))
        y = y * jax.lax.rsqrt(
            jnp.maximum(jnp.sum(y * y, axis=-1, keepdims=True), 1e-24))
    # einsum('ld,rd->lr') on the MXU
    o = jax.lax.dot_general(x, y, (((1,), (1,)), ((), ())),
                            preferred_element_type=jnp.float32)
    o_ref[...] = o.astype(o_ref.dtype)


def _dot(x, y, normalize):
    B, L, D = x.shape
    _, R, _ = y.shape
    tl = _pick_tile(L, 256, 8)        # sublane dim of x-block and output
    tr = _pick_tile(R, 256, 128)      # lane dim of output -> prefer multiple of 128
    grid = (B, pl.cdiv(L, tl), pl.cdiv(R, tr))
    cost = pl.CostEstimate(
        flops=2 * B * L * R * D,
        transcendentals=(B * (L + R)) if normalize else 0,
        bytes_accessed=4 * (B * L * D + B * R * D + B * L * R))
    return pl.pallas_call(
        functools.partial(_dot_kernel, normalize=normalize),
        out_shape=jax.ShapeDtypeStruct((B, L, R), jnp.float32),
        grid=grid,
        # x block is independent of the innermost (j) axis -> stays resident.
        in_specs=[pl.BlockSpec((None, tl, D), lambda b, i, j: (b, i, 0)),
                  pl.BlockSpec((None, tr, D), lambda b, i, j: (b, j, 0))],
        out_specs=pl.BlockSpec((None, tl, tr), lambda b, i, j: (b, i, j)),
        compiler_params=pltpu.CompilerParams(
            dimension_semantics=("parallel", "parallel", "parallel"),
            vmem_limit_bytes=VMEM_LIMIT),
        cost_estimate=cost,
    )(x, y)


# ---------------------------------------------------------------------------
# 'mul' / 'plus' / 'minus' / 'concat' — lane-dense flat-output kernel
# ---------------------------------------------------------------------------
def _pair_flat_kernel(xt_ref, yf_ref, o_ref, *, op):
    # xt_ref: (TL, TR*d)  — x already repeated along lanes with period d
    # yf_ref: (1,  TR*d)  — y rows flattened along lanes; broadcasts over sublanes
    # o_ref : (TL, TR*d)  — lane-dense (unmasked vst) output slab
    x = xt_ref[...]
    y = yf_ref[...]
    if op == 'mul':
        o = x * y
    elif op == 'plus':
        o = x + y
    else:  # 'minus'
        o = x - y
    o_ref[...] = o.astype(o_ref.dtype)


def _choose_pair_tiles(L, R, d_out):
    """Pick (tl, tr): tr divides R and tr*d_out is a multiple of 128 (or == R)."""
    tl = _pick_tile(L, 128, 8)
    divs = [t for t in range(1, R + 1) if R % t == 0]
    legal = [t for t in divs if (t * d_out) % 128 == 0] or [R]
    fitting = [t for t in legal if tl * t * d_out * 4 <= PAIR_OUT_TILE_BYTES]
    # Largest legal tile under the byte budget; otherwise the smallest legal one
    # (pathological R/d_out combinations only — still correct, just bigger tiles).
    tr = max(fitting) if fitting else min(legal)
    return tl, tr


def _pair_or_concat(x, y, matching_type):
    B, L, D = x.shape
    _, R, _ = y.shape
    out_dtype = jnp.result_type(x.dtype, y.dtype)

    if matching_type == 'concat':
        # concat(x_b, y_b) along the feature axis == (x zero-padded on the right)
        # + (y zero-padded on the left); lets concat reuse the elementwise kernel
        # with fully lane-dense stores.
        x_eff = jnp.concatenate([x, jnp.zeros_like(x)], axis=-1)   # (B, L, 2D)
        y_eff = jnp.concatenate([jnp.zeros_like(y), y], axis=-1)   # (B, R, 2D)
        d_out = 2 * D
        op = 'plus'
    else:
        x_eff, y_eff, d_out, op = x, y, D, matching_type

    tl, tr = _choose_pair_tiles(L, R, d_out)

    # Host-side layout plumbing (cheap relative to the (B, L, R, d_out) output):
    #   x_tiled[b, l, r*d + k] = x_eff[b, l, k]   -> (B, L, tr*d_out); one block
    #                                                per (b, i), resident over j.
    #   y_flat [b, 0, r*d + k] = y_eff[b, r, k]   -> (B, 1, R*d_out)
    x_tiled = jnp.tile(x_eff, (1, 1, tr))
    y_flat = jnp.reshape(y_eff, (B, 1, R * d_out))

    grid = (B, pl.cdiv(L, tl), pl.cdiv(R, tr))
    cost = pl.CostEstimate(
        flops=B * L * R * d_out,
        transcendentals=0,
        bytes_accessed=4 * (B * L * tr * d_out + B * R * d_out + B * L * R * d_out))

    out_flat = pl.pallas_call(
        functools.partial(_pair_flat_kernel, op=op),
        out_shape=jax.ShapeDtypeStruct((B, L, R * d_out), out_dtype),
        grid=grid,
        in_specs=[pl.BlockSpec((None, tl, tr * d_out), lambda b, i, j: (b, i, 0)),
                  pl.BlockSpec((None, 1, tr * d_out), lambda b, i, j: (b, 0, j))],
        out_specs=pl.BlockSpec((None, tl, tr * d_out), lambda b, i, j: (b, i, j)),
        compiler_params=pltpu.CompilerParams(
            dimension_semantics=("parallel", "parallel", "parallel"),
            vmem_limit_bytes=VMEM_LIMIT),
        cost_estimate=cost,
    )(x_tiled, y_flat)

    # Trailing-dim split: contiguous, effectively free at the XLA level.
    return out_flat.reshape(B, L, R, d_out)


# ---------------------------------------------------------------------------
# 'exact' — token-id match counts, tiled over R with an L-sum accumulator
# ---------------------------------------------------------------------------
def _exact_kernel(x_ref, y_ref, ox_ref, oy_ref):
    # x_ref: (1, L) int32, y_ref: (1, TR) int32, ox_ref: (1, L), oy_ref: (1, TR)
    j = pl.program_id(1)
    x = x_ref[0]                                            # (L,)
    y = y_ref[0]                                            # (TR,)
    m = (x[:, None] == y[None, :]).astype(jnp.float32)      # (L, TR)  VPU compare
    partial_x = jnp.sum(m, axis=1)[None, :]                 # (1, L)
    oy_ref[...] = jnp.sum(m, axis=0)[None, :]               # (1, TR)  fresh each tile

    # ox accumulates across the R-tile ("arbitrary") axis; output block stays
    # resident in VMEM because its index_map is constant in j.
    @pl.when(j == 0)
    def _():
        ox_ref[...] = partial_x

    @pl.when(j != 0)
    def _():
        ox_ref[...] = ox_ref[...] + partial_x


def _exact(x, y):
    B, L = x.shape
    _, R = y.shape
    tr = _pick_tile(R, 512, 128)     # R tile is the lane dim of the compare
    grid = (B, pl.cdiv(R, tr))
    cost = pl.CostEstimate(
        flops=2 * B * L * R,
        transcendentals=0,
        bytes_accessed=4 * (B * L + B * R) + 8 * (B * L + B * R))
    return pl.pallas_call(
        _exact_kernel,
        out_shape=(jax.ShapeDtypeStruct((B, L), jnp.float32),
                   jax.ShapeDtypeStruct((B, R), jnp.float32)),
        grid=grid,
        in_specs=[pl.BlockSpec((1, L), lambda b, j: (b, 0)),
                  pl.BlockSpec((1, tr), lambda b, j: (b, j))],
        out_specs=(pl.BlockSpec((1, L), lambda b, j: (b, 0)),   # accumulator over j
                   pl.BlockSpec((1, tr), lambda b, j: (b, j))),
        compiler_params=pltpu.CompilerParams(
            dimension_semantics=("parallel", "arbitrary"),
            vmem_limit_bytes=VMEM_LIMIT),
        cost_estimate=cost,
    )(x, y)


def matching(x, y, *, normalize=False, matching_type='dot'):
    if matching_type not in _VALID:
        raise ValueError(
            f'{matching_type} is not a valid matching type, {list(_VALID)} expected.')
    if matching_type == 'exact':
        return _exact(x, y)
    if matching_type == 'dot':
        return _dot(x, y, normalize)
    return _pair_or_concat(x, y, matching_type)


# ---------------------------------------------------------------------------
# Pure-JAX reference (mirrors the PyTorch forward)
# ---------------------------------------------------------------------------
def matching_ref(x, y, *, normalize=False, matching_type='dot'):
    if matching_type == 'dot':
        if normalize:
            x = x / jnp.maximum(jnp.linalg.norm(x, axis=-1, keepdims=True), 1e-12)
            y = y / jnp.maximum(jnp.linalg.norm(y, axis=-1, keepdims=True), 1e-12)
        return jnp.einsum('bld,brd->blr', x, y)
    if matching_type == 'exact':
        m = (x[:, :, None] == y[:, None, :]).astype(jnp.float32)
        return jnp.sum(m, axis=2), jnp.sum(m, axis=1)
    xb = x[:, :, None, :]
    yb = y[:, None, :, :]
    if matching_type == 'mul':
        return xb * yb
    if matching_type == 'plus':
        return xb + yb
    if matching_type == 'minus':
        return xb - yb
    if matching_type == 'concat':
        B, L, D = x.shape
        R = y.shape[1]
        xb = jnp.broadcast_to(xb, (B, L, R, D))
        yb = jnp.broadcast_to(yb, (B, L, R, D))
        return jnp.concatenate([xb, yb], axis=3)
    raise ValueError(matching_type)


# ---------------------------------------------------------------------------
if __name__ == "__main__":
    key = jax.random.PRNGKey(0)
    kx, ky, ktx, kty = jax.random.split(key, 4)

    B, L, R, D = 2, 8, 16, 32
    x = jax.random.normal(kx, (B, L, D), dtype=jnp.float32)
    y = jax.random.normal(ky, (B, R, D), dtype=jnp.float32)

    # integer token ids for 'exact' matching
    x_tok = jax.random.randint(ktx, (B, L), 0, 5, dtype=jnp.int32)
    y_tok = jax.random.randint(kty, (B, R), 0, 5, dtype=jnp.int32)

    # dot (plain + normalized/cosine)
    for norm in (False, True):
        out = matching(x, y, normalize=norm, matching_type='dot')
        jax.block_until_ready(out)
        ref = matching_ref(x, y, normalize=norm, matching_type='dot')
        assert out.shape == (B, L, R)
        assert jnp.allclose(out, ref, atol=1e-2, rtol=1e-2)

    # exact
    ex_l, ex_r = matching(x_tok, y_tok, matching_type='exact')
    jax.block_until_ready(ex_l)
    ref_l, ref_r = matching_ref(x_tok, y_tok, matching_type='exact')
    assert ex_l.shape == (B, L) and ex_r.shape == (B, R)
    assert jnp.allclose(ex_l, ref_l) and jnp.allclose(ex_r, ref_r)

    # mul / plus / minus
    for mt in ('mul', 'plus', 'minus'):
        out = matching(x, y, matching_type=mt)
        jax.block_until_ready(out)
        ref = matching_ref(x, y, matching_type=mt)
        assert out.shape == (B, L, R, D)
        assert jnp.allclose(out, ref, atol=1e-5, rtol=1e-5)

    # concat
    out = matching(x, y, matching_type='concat')
    jax.block_until_ready(out)
    ref = matching_ref(x, y, matching_type='concat')
    assert out.shape == (B, L, R, 2 * D)
    assert jnp.allclose(out, ref)

    print("KERNEL_OK")
</pallas_src>

<mosaic_0001>
module attributes {stable_mosaic.version = 11 : i64} {
  func.func @_dot_kernel(%arg0: i32, %arg1: i32, %arg2: i32, %arg3: memref<1x8x32xf32, #tpu.memory_space<vmem>>, %arg4: memref<1x16x32xf32, #tpu.memory_space<vmem>>, %arg5: memref<1x8x16xf32, #tpu.memory_space<vmem>>) attributes {dimension_semantics = [#tpu.dimension_semantics<parallel>, #tpu.dimension_semantics<parallel>, #tpu.dimension_semantics<parallel>], iteration_bounds = array<i64: 2, 1, 1>, scalar_prefetch = 0 : i64, scratch_operands = 0 : i64, tpu.core_type = #tpu.core_type<tc>, window_params = [{transform_indices = @transform_0, window_bounds = array<i64: 1, 8, 32>}, {transform_indices = @transform_1, window_bounds = array<i64: 1, 16, 32>}, {transform_indices = @transform_2, window_bounds = array<i64: 1, 8, 16>}]} {
    %c0 = arith.constant 0 : index
    %c0_0 = arith.constant 0 : index
    %c0_1 = arith.constant 0 : index
    %0 = vector.load %arg3[%c0, %c0_0, %c0_1] : memref<1x8x32xf32, #tpu.memory_space<vmem>>, vector<1x8x32xf32>
    %1 = vector.shape_cast %0 : vector<1x8x32xf32> to vector<8x32xf32>
    %c0_2 = arith.constant 0 : index
    %c0_3 = arith.constant 0 : index
    %c0_4 = arith.constant 0 : index
    %2 = vector.load %arg4[%c0_2, %c0_3, %c0_4] : memref<1x16x32xf32, #tpu.memory_space<vmem>>, vector<1x16x32xf32>
    %3 = vector.shape_cast %2 : vector<1x16x32xf32> to vector<16x32xf32>
    %cst = arith.constant dense<0.000000e+00> : vector<8x16xf32>
    %4 = tpu.matmul %1, %3, %cst {dimension_numbers = #tpu.dot_dimension_numbers<[1], [1], [0], [0], [0, 0, 1, 0], [], []>} : vector<8x32xf32>, vector<16x32xf32>, vector<8x16xf32> -> vector<8x16xf32>
    %c0_5 = arith.constant 0 : index
    %c0_6 = arith.constant 0 : index
    %c0_7 = arith.constant 0 : index
    %5 = vector.load %arg5[%c0_5, %c0_6, %c0_7] : memref<1x8x16xf32, #tpu.memory_space<vmem>>, vector<1x8x16xf32>
    %6 = vector.shape_cast %5 : vector<1x8x16xf32> to vector<8x16xf32>
    %7 = vector.shape_cast %4 : vector<8x16xf32> to vector<1x8x16xf32>
    tpu.vector_store %arg5[%c0_5, %c0_6, %c0_7], %7 {strides = array<i32>} : memref<1x8x16xf32, #tpu.memory_space<vmem>>, vector<1x8x16xf32>,
    return
  }
  func.func @transform_0(%arg0: i32, %arg1: i32, %arg2: i32) -> (i32, i32, i32) {
    %c0_i32 = arith.constant 0 : i32
    %c0_i32_0 = arith.constant 0 : i32
    return %arg0, %arg1, %c0_i32 : i32, i32, i32
  }
  func.func @transform_1(%arg0: i32, %arg1: i32, %arg2: i32) -> (i32, i32, i32) {
    %c0_i32 = arith.constant 0 : i32
    %c0_i32_0 = arith.constant 0 : i32
    return %arg0, %arg2, %c0_i32 : i32, i32, i32
  }
  func.func @transform_2(%arg0: i32, %arg1: i32, %arg2: i32) -> (i32, i32, i32) {
    %c0_i32 = arith.constant 0 : i32
    return %arg0, %arg1, %arg2 : i32, i32, i32
  }
}

</mosaic_0001>

<bundles_post_ra>
// kernel: tpu_custom_call.1
= control target key start
LH: loop header
LB: loop body
LE: loop exit
PB: predicated region body
PF: predicated region fallthrough
CT: control target
= control target key end

     0   :  { %7 = vsyncpa [#allocation3], 0  ;;  %s796_s0 = inlined_call_operand.hbm [shape: f32[2,8,32], index: 0, kind: input, shape index: {}]   ;;  %s797_s1 = inlined_call_operand.hbm [shape: f32[2,16,32], index: 1, kind: input, shape index: {}]   ;;  %s798_s2 = inlined_call_operand.hbm [shape: f32[2,8,16], index: 2, kind: output, shape index: {}]  }
   0x1   :  { %9 = vsyncpa [#allocation3 + $0x1], 0 }
   0x2   :  { %10 = vsyncpa [#allocation6], 0 }
   0x3   :  { %12 = vsyncpa [#allocation6 + $0x1], 0 }
   0x4   :  { %13 = vsyncpa [#allocation4], 0 }
   0x5   :  { %15 = vsyncpa [#allocation4 + $0x1], 0  ;;  %s652_s9 = smov 0   ;;  %s654_s10 = smov 0  }
   0x6   :  { %s656_s11 = smov 0   ;;  %s658_s12 = smov 0  }
   0x7   :  { %s660_s13 = smov 0   ;;  %s662_s14 = smov 0  }
   0x8 LB: > { %s397_s15 = sadd.s32 4294967295, %s633_s14   ;;  %s398_s16 = sadd.s32 4294967294, %s633_s14   ;;  %s633_s14 = sphi %s662_s14, %s21_s14   ;;  %s629_s13 = sphi %s660_s13, %s808_s13   ;;  %s625_s12 = sphi %s658_s12, %s807_s12   ;;  %s621_s11 = sphi %s656_s11, %s806_s11   ;;  %s617_s10 = sphi %s654_s10, %s805_s10   ;;  %s613_s9 = sphi %s652_s9, %s804_s9  }
   0x9   : > { %s40_s17 = sadd.s32 1, %s629_s13  ;;  %s49_s18 = sadd.s32 1, %s621_s11 }
   0xa   : > { %p42_p0 = scmp.ge.s32.totalorder %s40_s17, 2  ;;  %p56_p1 = scmp.ne.s32.totalorder %s621_s11, %s617_s10 }
   0xb   : > { %p57_p2 = scmp.eq.s32.totalorder %s633_s14, 0  ;;  %p62_p3 = scmp.ne.s32.totalorder %s617_s10, %s613_s9 }
   0xc   : > { %s810_s17 = smov (%p42_p0, %s40_s17), 0  ;;  %p63_p5 = scmp.eq.s32.totalorder %s397_s15, 0 }
   0xd   : > { %p693_p4 = por %p57_p2, %p56_p1  ;;  %s44_s20 = ssub.s32 %s629_s13, %s810_s17 }
   0xe   : > { %p118_p6 = scmp.eq.s32.totalorder %s397_s15, 1  ;;  %p47_p7 = scmp.eq.s32.totalorder %s44_s20, 0 }
   0xf   : > { %p699_p8 = por %p63_p5, %p62_p3  ;;  %p124_p10 = scmp.eq.s32.totalorder %s398_s16, 1 }
  0x10   : > { %p703_p9 = por %p118_p6, %p56_p1  ;;  %p400_p12 = scmp.ge.s32.totalorder %s633_s14, 2 }
  0x11   : > { %s708_s23 = scalar_select %p47_p7, %s621_s11, %s49_s18  }
  0x12   : > { %p710_p11 = por %p124_p10, %p62_p3  ;;  %p435_p13 = scmp.lt.s32.totalorder %s633_s14, 2 }
  0x13   : > { %s717_s25 = sand.u32 1, %s621_s11   ;;  %s402_s27 = sshll.u32 %s629_s13, 3 }
  0x14   : > { %s401_s26 = sshll.u32 %s717_s25, 3  ;;  %s153_s30 = scalar_lea.hbm %s796_s0, %s402_s27 }
  0x15   : > { %s148_s3 = scalar_lea.vmem [#allocation2], %s401_s26  ;;  %s155_s5 = sshll.u32 %s153_s30, 4  ;;  %s156_s5 = int_to_ptr.hbm [resolvable:$true] %s155_s5 }
  0x16   : > { %s157_s4 = sshll.u32 %s148_s3, 4  ;;  %p726_p0 = pnand %p435_p13, %p693_p4  ;;  %s158_s4 = int_to_ptr.vmem [resolvable:$true] %s157_s4 }
  0x17   : > { %p406_p1 = scmp.ge.s32.totalorder %s633_s14, 1  ;;  %p186_p2 = scmp.lt.s32.totalorder %s633_s14, 3 }
  0x18   : > { %s145_s7 = scalar_lea.sflag [#allocation3], %s717_s25  ;;  %s403_s8 = sshll.u32 %s717_s25, 4 }
  0x19   : > { %427 = dma.hbm_to_vmem [thread:$0]  (!%p726_p0), %s156_s5, 128, %s158_s4, %s145_s7  }
  0x1a   : > { %p187_p3 = pnand %p406_p1, %p186_p2  ;;  %s417_s15 = sshll.u32 %s629_s13, 4 }
  0x1b   : > { %s175_s20 = scalar_lea.hbm %s797_s1, %s417_s15  ;;  %s168_s26 = scalar_lea.vmem [#allocation5], %s403_s8 }
  0x1c   : > { %s178_s19 = sshll.u32 %s168_s26, 4  ;;  %s176_s27 = sshll.u32 %s175_s20, 4  ;;  %s179_s19 = int_to_ptr.vmem [resolvable:$true] %s178_s19  ;;  %s177_s27 = int_to_ptr.hbm [resolvable:$true] %s176_s27 }
  0x1d   : > { %s165_s28 = scalar_lea.sflag [#allocation6], %s717_s25  ;;  %s635_s29 = smov 128  }
  0x1e   : > { %s636_s30 = smov 8   ;;  %190 = sbr.rel (%p187_p3) target bundleno = 176 (0xb0), region = 28 }
  0x1f   : > { %430 = dma.hbm_to_vmem [thread:$0]  (!%p726_p0), %s177_s27, 256, %s179_s19, %s165_s28, %s635_s29, %s635_s29, %s636_s30  }
  0x20   : > { %s744_s3 = sand.u32 (!%p187_p3), 1, %s617_s10  }
  0x21   : > { %s407_s4 = sshll.u32 (!%p187_p3), %s744_s3, 3  ;;  %s193_s5 = scalar_lea.sflag (!%p187_p3), [#allocation3], %s744_s3 }
  0x22   : > { %s196_s7 = scalar_lea.vmem (!%p187_p3), [#allocation2], %s407_s4 }
  0x23   : > { %600 = dma.done.wait (%p699_p8), %s193_s5, 128  }
  0x24   : > { %602 = vsyncadd (%p699_p8), %s193_s5, 4294967168  ;;  %s408_s25 = sshll.u32 %s744_s3, 4  ;;  %s203_s6 = scalar_lea.sflag [#allocation6], %s744_s3 }
  0x25   : > { %s206_s8 = scalar_lea.vmem [#allocation5], %s408_s25 }
  0x26   : > { %604 = dma.done.wait (%p699_p8), %s203_s6, 256  }
  0x27   : > { %606 = vsyncadd (%p699_p8), %s203_s6, 4294967040  ;;  %vm237_vm0 = vcmask 261120   ;;  %v236_v0 = vld [vmem:[%s206_s8 + $0x8] sm:$0xff]  ;;  %v235_v1 = vld [vmem:[%s206_s8] sm:$0xff]  ;;  %s414_s15 = sshll.u32 %s625_s12, 3  ;;  %s232_s26 = scalar_lea.vmem [#allocation7], %s407_s4 }
  0x28   : > { %410 = vmatpush.xpose.msk.msra.mxu0 %vm237_vm0, %v236_v0  ;;  %v234_v2 = vld [vmem:[%s196_s7] sm:$0xff]  ;;  %s282_s20 = scalar_lea.hbm %s798_s2, %s414_s15  ;;  %s284_s19 = sshll.u32 %s232_s26, 4  ;;  %vm267_vm1 = vcmask 130048   ;;  %s285_s19 = int_to_ptr.vmem [resolvable:$true] %s284_s19 }
  0x29   : > { %s286_s27 = sshll.u32 %s282_s20, 4  ;;  %s270_s21 = scalar_lea.sflag [#allocation4], %s744_s3  ;;  %s287_s27 = int_to_ptr.hbm [resolvable:$true] %s286_s27 }
  0x2a   : > { %s561_s28 = sshra.s32 %s287_s27, 4  ;;  %s567_s5 = scalar_lea.hbm %s798_s2, 16  ;;  %s562_s28 = int_to_ptr.hbm [resolvable:$true] %s561_s28 }
  0x2b   : > { %s563_s29 = scalar_lea.hbm %s562_s28, 8  ;;  %p568_p7 = scmp.lt.s32.totalorder %s562_s28, %s798_s2 }
  0x2c   : > { %411 = vmatpush.xpose.msk.msra.mxu0 %vm237_vm0, %v235_v1  ;;  %p564_p4 = scmp.ne.s32.totalorder %s562_s28, %s563_s29  ;;  %p569_p8 = scmp.lt.s32.totalorder %s567_s5, %s563_s29 }
  0x2e   : > { %p565_p5 = pnand %p564_p4, %p703_p9  ;;  %p570_p10 = por %p569_p8, %p568_p7 }
  0x2f   : > { %412 = vmatmul.msk.f32.vlgmr.msra.gmra.mxu0 %vm237_vm0, %v234_v2 }
  0x30   : > { %p566_p6 = pneg %p565_p5 }
  0x32   : > { %p571_p13 = pnand %p570_p10, %p566_p6 }
  0xac   : > { %v264_v3 = vpop.f32.mrf.mxu0 }
  0xad   : > { %268 = vst.msk [vmem:[%s232_s26] sm:$0xff] %vm267_vm1, %v264_v3 }
  0xae   : > { %574 = shalt.err (!%p571_p13)
}
  0xaf   : > { %422 = dma.vmem_to_hbm [thread:$0]  (%p703_p9), %s285_s19, 128, %s287_s27, %s270_s21  }
  0xb0 PF: > { %s298_s3 = sand.u32 1, %s613_s9   ;;  %p432_p0 = pnand %p400_p12, %p710_p11 }
  0xb1   : > { %s299_s25 = scalar_lea.sflag [#allocation4], %s298_s3 }
  0xb2   : > { %p433_p1 = pneg %p432_p0 }
  0xb4   : > { %608 = dma.done.wait (%p433_p1), %s299_s25, 128  }
  0xb5   : > { %610 = vsyncadd (%p433_p1), %s299_s25, 4294967168  ;;  %s21_s14 = sadd.s32 1, %s633_s14   ;;  %s804_s9 = smov %s617_s10 }
  0xb6   : > { %p18_p2 = scmp.ge.s32.totalorder %s21_s14, 4   ;;  %s805_s10 = smov %s621_s11 }
  0xb7   : > { %s806_s11 = smov %s708_s23  ;;  %s807_s12 = smov %s629_s13 }
  0xb8   : > { %s808_s13 = smov %s810_s17  ;;  %20 = sbr.rel (!%p18_p2) target bundleno = 8 (0x8), region = 86 }
  0xbd   :  { %305 = vsyncpa [#allocation3], 1 }
  0xbe   :  { %307 = vsyncpa [#allocation3 + $0x1], 1 }
  0xbf   :  { %308 = vsyncpa [#allocation6], 1 }
  0xc0   :  { %310 = vsyncpa [#allocation6 + $0x1], 1 }
  0xc1   :  { %311 = vsyncpa [#allocation4], 1 }
  0xc2   :  { %313 = vsyncpa [#allocation4 + $0x1], 1 }

</bundles_post_ra>
